<compile_context>
chip_gen: v7x
topology: tpu7x:2x2x1
jax: 0.10.0
libtpu: 0.0.40
codegen_flags: <defaults>
</compile_context>

<pallas_src>
import functools

import numpy as np
import jax
import jax.numpy as jnp
from jax.experimental import pallas as pl
from jax.experimental.pallas import tpu as pltpu


def _np_loss_kernel(coef_ref, emb_ref, *refs, psd_flag, dh, inv_k, inv_b):
    if psd_flag:
        kop_ref, mult_ref, same_ref, out_ref = refs
    else:
        same_ref, out_ref = refs

    b = emb_ref.shape[0]
    e = emb_ref[...]                                          # (b, D) f32, lane-dense

    total = jnp.zeros((1, 1), jnp.float32)

    if psd_flag:
        # Single fused MXU matmul: columns are [Re half-spectrum | Im half-spectrum].
        # bf16 operands, f32 accumulation; everything after stays f32.
        reim = jnp.dot(e.astype(jnp.bfloat16), kop_ref[...],
                       preferred_element_type=jnp.float32)    # (b, 2*dh)
        power = reim * reim
        avg = jnp.sum(power, axis=0, keepdims=True) * inv_b   # (1, 2*dh) batch mean
        psd = avg[:, :dh] + avg[:, dh:]                        # (1, dh) = mean |X|^2
        mult = mult_ref[...]                                   # (1, dh) bin multiplicity
        log_sum = jnp.sum(mult * jnp.log(psd), axis=1, keepdims=True)   # == full-spec sum
        psd_sum = jnp.sum(mult * psd, axis=1, keepdims=True)
        loss_psd = jnp.clip(log_sum * inv_k - jnp.log(psd_sum * inv_k),
                            0.0, 100.0)
        total = total + coef_ref[0] * loss_psd                 # coef = -lamda*epoch

    # ---- pairwise euclidean distances + label softmax loss (all f32) ----
    gram = jax.lax.dot_general(e, e, (((1,), (1,)), ((), ())),
                               preferred_element_type=jnp.float32)       # (b, b)
    rows = jax.lax.broadcasted_iota(jnp.int32, (b, b), 0)
    cols = jax.lax.broadcasted_iota(jnp.int32, (b, b), 1)
    offdiag = rows != cols

    # Row norms directly from e (off the Gram critical path); lane-oriented copy
    # taken from the Gram diagonal with one masked sublane reduce.
    sq_col = jnp.sum(e * e, axis=1, keepdims=True)                       # (b, 1)
    sq_row = jnp.sum(jnp.where(offdiag, 0.0, gram), axis=0, keepdims=True)  # (1, b)
    d2 = jnp.maximum(sq_col + sq_row - 2.0 * gram, 0.0)
    dist = jnp.sqrt(d2)                                                  # diag ~ 0

    # Softmax over the off-diagonal entries of each row (== torch's
    # flatten/view diagonal-removal trick).
    neg_d = -dist
    m = jnp.max(jnp.where(offdiag, neg_d, -jnp.inf), axis=1, keepdims=True)
    ex = jnp.where(offdiag, jnp.exp(neg_d - m), 0.0)
    denom = jnp.sum(ex, axis=1, keepdims=True)                           # (b, 1)
    num = jnp.sum(ex * same_ref[...], axis=1, keepdims=True)             # (b, 1)
    # -log(num/denom) == log(denom) - log(num); num == 0 (no same-label peer)
    # yields -inf exactly like the PyTorch reference.
    label_loss = jnp.sum(jnp.log(denom) - jnp.log(num), axis=0,
                         keepdims=True) * (1.0 / 200.0)                  # (1, 1)

    out_ref[...] = total + label_loss


@functools.lru_cache(maxsize=8)
def _dft_half_operators(h, w):
    """Fused bf16 half-spectrum DFT operator and f32 multiplicity row (cached).

    Returns:
      kop : (h*w, 2*h*wh) bf16, columns = [Re | Im] half-spectrum Kronecker DFT.
      mult: (1, h*wh) f32, how many full-spectrum bins each half-spectrum bin
            represents (1 for v==0 / Nyquist, else 2), so weighted half-spectrum
            reductions equal full-spectrum reductions for real inputs.
    """
    wh = w // 2 + 1
    ih = np.arange(h, dtype=np.float64)
    iw = np.arange(w, dtype=np.float64)
    iwh = np.arange(wh, dtype=np.float64)
    ang_h = 2.0 * np.pi * np.outer(ih, ih) / h          # (h, h)
    ang_w = 2.0 * np.pi * np.outer(iw, iwh) / w         # (w, wh)
    ch, sh = np.cos(ang_h), np.sin(ang_h)
    cw, sw = np.cos(ang_w), np.sin(ang_w)
    kre = np.kron(ch, cw) - np.kron(sh, sw)             # (h*w, h*wh)
    kim = np.kron(ch, sw) + np.kron(sh, cw)             # sign irrelevant for |X|^2
    kop = np.concatenate([kre, kim], axis=1)            # (h*w, 2*h*wh)
    mult_v = np.where((np.arange(wh) == 0) | (2 * np.arange(wh) == w), 1.0, 2.0)
    mult = np.tile(mult_v, h)[None, :].astype(np.float64)
    return (jnp.asarray(kop, dtype=jnp.bfloat16),
            jnp.asarray(mult, dtype=jnp.float32))


@functools.partial(jax.jit, static_argnames=("psd_flag",))
def _np_loss_jit(embeddings, labels, lamda, epoch, kop, mult, *, psd_flag):
    b, c, h, w = embeddings.shape
    d = c * h * w

    emb = embeddings.reshape(b, d).astype(jnp.float32)   # matches torch .view(b, -1)
    lab = labels.reshape(b)
    same = (lab[:, None] == lab[None, :]).astype(jnp.float32)   # (b, b) label mask
    # SMEM scalar: epoch/lamda are traced, so changes never recompile.
    coef = jnp.reshape((-lamda * epoch).astype(jnp.float32), (1,))
    dh = mult.shape[1]

    kern = functools.partial(_np_loss_kernel, psd_flag=bool(psd_flag), dh=int(dh),
                             inv_k=1.0 / float(h * w), inv_b=1.0 / float(b))
    vmem = pl.BlockSpec(memory_space=pltpu.MemorySpace.VMEM)
    smem = pl.BlockSpec(memory_space=pltpu.MemorySpace.SMEM)
    if psd_flag:
        operands = (coef, emb, kop, mult, same)
        in_specs = [smem, vmem, vmem, vmem, vmem]
    else:
        operands = (coef, emb, same)
        in_specs = [smem, vmem, vmem]

    out = pl.pallas_call(          # gridless: single invocation, single-buffered VMEM
        kern,
        out_shape=jax.ShapeDtypeStruct((1, 1), jnp.float32),
        in_specs=in_specs,
        out_specs=vmem,
    )(*operands)
    return out[0, 0]


def np_loss_pallas(embeddings, labels, *, lamda, psd_flag=True, epoch=1):
    b, c, h, w = embeddings.shape
    assert c == 1, "NP_Loss.psd squeezes the channel dim, so c must be 1"
    kop, mult = _dft_half_operators(h, w)       # host-cached constants
    return _np_loss_jit(embeddings, labels, lamda, epoch, kop, mult,
                        psd_flag=bool(psd_flag))


def np_loss_ref(embeddings, labels, *, lamda, psd_flag=True, epoch=1):
    """Pure-JAX reference mirroring the PyTorch module."""
    b, c, h, w = embeddings.shape
    x = embeddings.reshape(b, h, w)
    loss = jnp.float32(0.0)
    if psd_flag:
        k = h * w
        dft = jnp.fft.fft2(x)
        avgpsd = jnp.mean((dft * jnp.conj(dft)).real, axis=0)
        psd = jnp.clip(jnp.sum(jnp.log(avgpsd)) / k
                       - jnp.log(jnp.sum(avgpsd) / k), 0.0, 100.0)
        loss = loss + (-lamda * epoch) * psd
    e = embeddings.reshape(b, -1)
    dmat = jnp.sqrt(jnp.maximum(
        jnp.sum((e[:, None, :] - e[None, :, :]) ** 2, axis=-1), 0.0))
    dm = dmat.flatten()[1:].reshape(b - 1, b + 1)[:, :-1].reshape(b, b - 1)
    sm = jax.nn.softmax(-dm, axis=1)
    lab = labels.reshape(b)
    for i in range(b):
        idx = jnp.concatenate([lab[:i], lab[i + 1:]])
        mask = (idx == lab[i]).astype(sm.dtype)
        loss = loss + (-jnp.log(jnp.sum(sm[i] * mask)) / 200.0)
    return loss


if __name__ == "__main__":
    key = jax.random.PRNGKey(0)
    b, c, h, w = 8, 1, 16, 16
    embeddings = jax.random.normal(key, (b, c, h, w), dtype=jnp.float32)
    labels = jnp.array([0, 0, 1, 1, 2, 2, 3, 3], dtype=jnp.int32)
    lamda = 0.5

    out = np_loss_pallas(embeddings, labels, lamda=lamda, psd_flag=True, epoch=1)
    out = jax.block_until_ready(out)

    ref = jax.block_until_ready(
        np_loss_ref(embeddings, labels, lamda=lamda, psd_flag=True, epoch=1))

    assert np.isfinite(float(out))
    np.testing.assert_allclose(float(out), float(ref), rtol=5e-3, atol=5e-3)

    # Different epoch/lamda reuse the same compiled executable (traced scalars).
    out2 = jax.block_until_ready(
        np_loss_pallas(embeddings, labels, lamda=lamda, psd_flag=True, epoch=3))
    ref2 = jax.block_until_ready(
        np_loss_ref(embeddings, labels, lamda=lamda, psd_flag=True, epoch=3))
    np.testing.assert_allclose(float(out2), float(ref2), rtol=5e-3, atol=5e-3)

    print("KERNEL_OK")
</pallas_src>

<mosaic_0001>
module attributes {stable_mosaic.version = 11 : i64} {
  func.func @_np_loss_kernel(%arg0: memref<1xf32, #tpu.memory_space<smem>>, %arg1: memref<8x256xf32, #tpu.memory_space<vmem>>, %arg2: memref<256x288xbf16, #tpu.memory_space<vmem>>, %arg3: memref<1x144xf32, #tpu.memory_space<vmem>>, %arg4: memref<8x8xf32, #tpu.memory_space<vmem>>, %arg5: memref<1x1xf32, #tpu.memory_space<vmem>>) attributes {dimension_semantics = [], scalar_prefetch = 0 : i64, scratch_operands = 0 : i64, tpu.core_type = #tpu.core_type<tc>} {
    %c0 = arith.constant 0 : index
    %c0_0 = arith.constant 0 : index
    %0 = vector.load %arg1[%c0, %c0_0] : memref<8x256xf32, #tpu.memory_space<vmem>>, vector<8x256xf32>
    %cst = arith.constant 0.000000e+00 : f32
    %1 = vector.broadcast %cst : f32 to vector<1x1xf32>
    %2 = arith.truncf %0 : vector<8x256xf32> to vector<8x256xbf16>
    %c0_1 = arith.constant 0 : index
    %c0_2 = arith.constant 0 : index
    %3 = vector.load %arg2[%c0_1, %c0_2] : memref<256x288xbf16, #tpu.memory_space<vmem>>, vector<256x288xbf16>
    %cst_3 = arith.constant dense<0.000000e+00> : vector<8x288xf32>
    %4 = tpu.matmul %2, %3, %cst_3 {dimension_numbers = #tpu.dot_dimension_numbers<[1], [0], [0], [1], [0, 0, 1, 1], [], []>} : vector<8x256xbf16>, vector<256x288xbf16>, vector<8x288xf32> -> vector<8x288xf32>
    %5 = arith.mulf %4, %4 : vector<8x288xf32>
    %cst_4 = arith.constant dense<0.000000e+00> : vector<288xf32>
    %6 = vector.multi_reduction <add>, %5, %cst_4 [0] : vector<8x288xf32> to vector<288xf32>
    %7 = vector.shape_cast %6 : vector<288xf32> to vector<1x288xf32>
    %cst_5 = arith.constant 1.250000e-01 : f32
    %8 = vector.broadcast %cst_5 : f32 to vector<1x288xf32>
    %9 = arith.mulf %7, %8 : vector<1x288xf32>
    %10 = vector.extract_strided_slice %9 {offsets = [0, 0], sizes = [1, 144], strides = [1, 1]} : vector<1x288xf32> to vector<1x144xf32>
    %11 = vector.extract_strided_slice %9 {offsets = [0, 144], sizes = [1, 144], strides = [1, 1]} : vector<1x288xf32> to vector<1x144xf32>
    %12 = arith.addf %10, %11 : vector<1x144xf32>
    %c0_6 = arith.constant 0 : index
    %c0_7 = arith.constant 0 : index
    %13 = vector.load %arg3[%c0_6, %c0_7] : memref<1x144xf32, #tpu.memory_space<vmem>>, vector<1x144xf32>
    %14 = math.log %12 : vector<1x144xf32>
    %15 = arith.mulf %13, %14 : vector<1x144xf32>
    %cst_8 = arith.constant dense<0.000000e+00> : vector<1xf32>
    %16 = vector.multi_reduction <add>, %15, %cst_8 [1] : vector<1x144xf32> to vector<1xf32>
    %17 = vector.shape_cast %16 : vector<1xf32> to vector<1x1xf32>
    %18 = arith.mulf %13, %12 : vector<1x144xf32>
    %cst_9 = arith.constant dense<0.000000e+00> : vector<1xf32>
    %19 = vector.multi_reduction <add>, %18, %cst_9 [1] : vector<1x144xf32> to vector<1xf32>
    %20 = vector.shape_cast %19 : vector<1xf32> to vector<1x1xf32>
    %cst_10 = arith.constant 3.906250e-03 : f32
    %21 = vector.broadcast %cst_10 : f32 to vector<1x1xf32>
    %22 = arith.mulf %17, %21 : vector<1x1xf32>
    %cst_11 = arith.constant 3.906250e-03 : f32
    %23 = vector.broadcast %cst_11 : f32 to vector<1x1xf32>
    %24 = arith.mulf %20, %23 : vector<1x1xf32>
    %25 = math.log %24 : vector<1x1xf32>
    %26 = arith.subf %22, %25 : vector<1x1xf32>
    %cst_12 = arith.constant 0.000000e+00 : f32
    %cst_13 = arith.constant 1.000000e+02 : f32
    %27 = vector.broadcast %cst_12 : f32 to vector<1x1xf32>
    %28 = arith.maximumf %27, %26 : vector<1x1xf32>
    %29 = vector.broadcast %cst_13 : f32 to vector<1x1xf32>
    %30 = arith.minimumf %29, %28 : vector<1x1xf32>
    %c0_14 = arith.constant 0 : index
    %31 = memref.load %arg0[%c0_14] : memref<1xf32, #tpu.memory_space<smem>>
    %32 = vector.broadcast %31 : f32 to vector<1x1xf32>
    %33 = arith.mulf %32, %30 : vector<1x1xf32>
    %34 = arith.addf %1, %33 : vector<1x1xf32>
    %cst_15 = arith.constant dense<0.000000e+00> : vector<8x8xf32>
    %35 = tpu.matmul %0, %0, %cst_15 {dimension_numbers = #tpu.dot_dimension_numbers<[1], [1], [0], [0], [0, 0, 1, 0], [], []>} : vector<8x256xf32>, vector<8x256xf32>, vector<8x8xf32> -> vector<8x8xf32>
    %36 = tpu.iota {dimensions = array<i32: 0>} : vector<8x8xi32>
    %37 = tpu.iota {dimensions = array<i32: 1>} : vector<8x8xi32>
    %38 = arith.cmpi ne, %36, %37 : vector<8x8xi32>
    %39 = arith.mulf %0, %0 : vector<8x256xf32>
    %cst_16 = arith.constant dense<0.000000e+00> : vector<8xf32>
    %40 = vector.multi_reduction <add>, %39, %cst_16 [1] : vector<8x256xf32> to vector<8xf32>
    %41 = vector.shape_cast %40 : vector<8xf32> to vector<8x1xf32>
    %cst_17 = arith.constant 0.000000e+00 : f32
    %42 = vector.broadcast %cst_17 : f32 to vector<8x8xf32>
    %43 = arith.select %38, %42, %35 : vector<8x8xi1>, vector<8x8xf32>
    %cst_18 = arith.constant dense<0.000000e+00> : vector<8xf32>
    %44 = vector.multi_reduction <add>, %43, %cst_18 [0] : vector<8x8xf32> to vector<8xf32>
    %45 = vector.shape_cast %44 : vector<8xf32> to vector<1x8xf32>
    %46 = vector.broadcast %41 : vector<8x1xf32> to vector<8x8xf32>
    %47 = vector.broadcast %45 : vector<1x8xf32> to vector<8x8xf32>
    %48 = arith.addf %46, %47 : vector<8x8xf32>
    %cst_19 = arith.constant 2.000000e+00 : f32
    %49 = vector.broadcast %cst_19 : f32 to vector<8x8xf32>
    %50 = arith.mulf %49, %35 : vector<8x8xf32>
    %51 = arith.subf %48, %50 : vector<8x8xf32>
    %cst_20 = arith.constant 0.000000e+00 : f32
    %52 = vector.broadcast %cst_20 : f32 to vector<8x8xf32>
    %53 = arith.maximumf %51, %52 : vector<8x8xf32>
    %54 = math.sqrt %53 : vector<8x8xf32>
    %cst_21 = arith.constant 0.000000e+00 : f32
    %55 = vector.broadcast %cst_21 : f32 to vector<8x8xf32>
    %56 = arith.subf %55, %54 : vector<8x8xf32>
    %cst_22 = arith.constant 0xFF800000 : f32
    %57 = vector.broadcast %cst_22 : f32 to vector<8x8xf32>
    %58 = arith.select %38, %56, %57 : vector<8x8xi1>, vector<8x8xf32>
    %cst_23 = arith.constant dense<0xFF800000> : vector<8xf32>
    %59 = vector.multi_reduction <maximumf>, %58, %cst_23 [1] : vector<8x8xf32> to vector<8xf32>
    %60 = vector.shape_cast %59 : vector<8xf32> to vector<8x1xf32>
    %61 = vector.broadcast %60 : vector<8x1xf32> to vector<8x8xf32>
    %62 = arith.subf %56, %61 : vector<8x8xf32>
    %63 = math.exp %62 : vector<8x8xf32>
    %cst_24 = arith.constant 0.000000e+00 : f32
    %64 = vector.broadcast %cst_24 : f32 to vector<8x8xf32>
    %65 = arith.select %38, %63, %64 : vector<8x8xi1>, vector<8x8xf32>
    %cst_25 = arith.constant dense<0.000000e+00> : vector<8xf32>
    %66 = vector.multi_reduction <add>, %65, %cst_25 [1] : vector<8x8xf32> to vector<8xf32>
    %67 = vector.shape_cast %66 : vector<8xf32> to vector<8x1xf32>
    %c0_26 = arith.constant 0 : index
    %c0_27 = arith.constant 0 : index
    %68 = vector.load %arg4[%c0_26, %c0_27] : memref<8x8xf32, #tpu.memory_space<vmem>>, vector<8x8xf32>
    %69 = arith.mulf %65, %68 : vector<8x8xf32>
    %cst_28 = arith.constant dense<0.000000e+00> : vector<8xf32>
    %70 = vector.multi_reduction <add>, %69, %cst_28 [1] : vector<8x8xf32> to vector<8xf32>
    %71 = vector.shape_cast %70 : vector<8xf32> to vector<8x1xf32>
    %72 = math.log %67 : vector<8x1xf32>
    %73 = math.log %71 : vector<8x1xf32>
    %74 = arith.subf %72, %73 : vector<8x1xf32>
    %cst_29 = arith.constant dense<0.000000e+00> : vector<1xf32>
    %75 = vector.multi_reduction <add>, %74, %cst_29 [0] : vector<8x1xf32> to vector<1xf32>
    %76 = vector.shape_cast %75 : vector<1xf32> to vector<1x1xf32>
    %cst_30 = arith.constant 5.000000e-03 : f32
    %77 = vector.broadcast %cst_30 : f32 to vector<1x1xf32>
    %78 = arith.mulf %76, %77 : vector<1x1xf32>
    %79 = arith.addf %34, %78 : vector<1x1xf32>
    %c0_31 = arith.constant 0 : index
    %c0_32 = arith.constant 0 : index
    %80 = vector.load %arg5[%c0_31, %c0_32] : memref<1x1xf32, #tpu.memory_space<vmem>>, vector<1x1xf32>
    tpu.vector_store %arg5[%c0_31, %c0_32], %79 {strides = array<i32>} : memref<1x1xf32, #tpu.memory_space<vmem>>, vector<1x1xf32>,
    return
  }
}

</mosaic_0001>

<bundles_post_ra>
// kernel: _np_loss_jit.1
= control target key start
LH: loop header
LB: loop body
LE: loop exit
PB: predicated region body
PF: predicated region fallthrough
CT: control target
= control target key end

     0   :  { %s1105_s0 = inlined_call_operand.<no memory space> [shape: f32[1], index: 0, kind: input, shape index: {}]   ;;  %s1106_s1 = inlined_call_operand.vmem [shape: f32[8,256], index: 1, kind: input, shape index: {}]   ;;  %s1107_s2 = inlined_call_operand.vmem [shape: bf16[256,288], index: 2, kind: input, shape index: {}]   ;;  %s1108_s3 = inlined_call_operand.vmem [shape: f32[1,144], index: 3, kind: input, shape index: {}]   ;;  %s1109_s4 = inlined_call_operand.vmem [shape: f32[8,8], index: 4, kind: input, shape index: {}]   ;;  %s1110_s5 = inlined_call_operand.hbm [shape: f32[1,1], index: 5, kind: output, shape index: {}]  }
   0x1   :  { %v773_v0 = vld [vmem:[%s1107_s2 + $0x4] ss:$12 sps:$4 sm:$0xff]   ;;  %v775_v1 = vld [vmem:[%s1107_s2 + $0xc8] ss:$12 sps:$4 sm:$0xff]   ;;  %v776_v2 = vld [vmem:[%s1107_s2] ss:$12 sps:$4 sm:$0xff]  }
   0x2   :  { %347 = vmatprep.subr.bf16.mxu0 %v773_v0  ;;  %748 = vmatprep.subr.bf16.mxu1 %v775_v1  ;;  %v777_v3 = vld [vmem:[%s1107_s2 + $0x8] ss:$12 sps:$4 sm:$0xff]   ;;  %v780_v5 = vld [vmem:[%s1107_s2 + $0xe0] ss:$12 sps:$4 sm:$0xff]   ;;  %v781_v6 = vld [vmem:[%s1107_s2 + $0x18] ss:$12 sps:$4 sm:$0xff]  }
   0x3   :  { %348 = vmatpush1.bf16.msra.mxu0 %v776_v2  ;;  %v778_v4 = vld [vmem:[%s1107_s2 + $0x1c] ss:$12 sps:$4 sm:$0xff]   ;;  %749 = vmatpush3.bf16.msra.mxu1 %v777_v3  ;;  %v782_v7 = vld [vmem:[%s1107_s2 + $0x20] ss:$12 sps:$4 sm:$0xff]   ;;  %v785_v9 = vld [vmem:[%s1107_s2 + $0xf8] ss:$12 sps:$4 sm:$0xff]  }
   0x4   :  { %349 = vmatprep.subr.bf16.mxu0 %v778_v4  ;;  %750 = vmatprep.subr.bf16.mxu1 %v780_v5  ;;  %v783_v8 = vld [vmem:[%s1107_s2 + $0x34] ss:$12 sps:$4 sm:$0xff]   ;;  %v786_v10 = vld [vmem:[%s1107_s2 + $0x30] ss:$12 sps:$4 sm:$0xff]   ;;  %v787_v11 = vld [vmem:[%s1107_s2 + $0x38] ss:$12 sps:$4 sm:$0xff]  }
   0x5   :  { %v788_v12 = vld [vmem:[%s1107_s2 + $0x4c] ss:$12 sps:$4 sm:$0xff]   ;;  %v790_v13 = vld [vmem:[%s1107_s2 + $0x110] ss:$12 sps:$4 sm:$0xff]   ;;  %v791_v14 = vld [vmem:[%s1107_s2 + $0x48] ss:$12 sps:$4 sm:$0xff]  }
   0x6   :  { %v792_v15 = vld [vmem:[%s1107_s2 + $0x50] ss:$12 sps:$4 sm:$0xff]   ;;  %v795_v17 = vld [vmem:[%s1107_s2 + $0x128] ss:$12 sps:$4 sm:$0xff]   ;;  %v796_v18 = vld [vmem:[%s1107_s2 + $0x60] ss:$12 sps:$4 sm:$0xff]  }
   0x7   :  { %350 = vmatpush1.bf16.msra.mxu0 %v781_v6  ;;  %751 = vmatpush3.bf16.msra.mxu1 %v782_v7  ;;  %v793_v16 = vld [vmem:[%s1107_s2 + $0x64] ss:$12 sps:$4 sm:$0xff]   ;;  %v797_v19 = vld [vmem:[%s1107_s2 + $0x68] ss:$12 sps:$4 sm:$0xff]   ;;  %v800_v21 = vld [vmem:[%s1107_s2 + $0x140] ss:$12 sps:$4 sm:$0xff]  }
   0x8   :  { %351 = vmatprep.subr.bf16.mxu0 %v783_v8  ;;  %752 = vmatprep.subr.bf16.mxu1 %v785_v9  ;;  %v798_v20 = vld [vmem:[%s1107_s2 + $0x7c] ss:$12 sps:$4 sm:$0xff]   ;;  %v801_v22 = vld [vmem:[%s1107_s2 + $0x78] ss:$12 sps:$4 sm:$0xff]   ;;  %v802_v23 = vld [vmem:[%s1107_s2 + $0x80] ss:$12 sps:$4 sm:$0xff]  }
   0x9   :  { %v803_v24 = vld [vmem:[%s1107_s2 + $0x94] ss:$12 sps:$4 sm:$0xff]   ;;  %v805_v25 = vld [vmem:[%s1107_s2 + $0x158] ss:$12 sps:$4 sm:$0xff]   ;;  %v806_v26 = vld [vmem:[%s1107_s2 + $0x90] ss:$12 sps:$4 sm:$0xff]  }
   0xa   :  { %v807_v27 = vld [vmem:[%s1107_s2 + $0x98] ss:$12 sps:$4 sm:$0xff]   ;;  %v810_v29 = vld [vmem:[%s1107_s2 + $0x170] ss:$12 sps:$4 sm:$0xff]   ;;  %v24_v30 = vld [vmem:[%s1106_s1 + $0x8] sm:$0xff] }
   0xb   :  { %352 = vmatpush1.bf16.msra.mxu0 %v786_v10  ;;  %753 = vmatpush3.bf16.msra.mxu1 %v787_v11  ;;  %v808_v28 = vld [vmem:[%s1107_s2 + $0xac] ss:$12 sps:$4 sm:$0xff]   ;;  %v26_v31 = vpack.c.bf16 %v24_v30, %v24_v30  ;;  %v630_v32 = vmul.f32 %v24_v30, %v24_v30  ;;  %v811_v33 = vld [vmem:[%s1107_s2 + $0xa8] ss:$12 sps:$4 sm:$0xff]   ;;  %v23_v34 = vld [vmem:[%s1106_s1] sm:$0xff] }
   0xc   :  { %353 = vmatprep.subr.bf16.mxu0 %v788_v12  ;;  %754 = vmatprep.subr.bf16.mxu1 %v790_v13  ;;  %v812_v35 = vld [vmem:[%s1107_s2 + $0xb0] ss:$12 sps:$4 sm:$0xff]   ;;  %v629_v37 = vmul.f32 %v23_v34, %v23_v34  ;;  %v25_v39 = vpack.c.bf16 %v23_v34, %v23_v34  ;;  %v815_v40 = vld [vmem:[%s1107_s2 + $0xc0] ss:$12 sps:$4 sm:$0xff]   ;;  %v818_v42 = vld [vmem:[%s1107_s2 + $0xd8] ss:$12 sps:$4 sm:$0xff]  }
   0xd   :  { %v813_v36 = vld [vmem:[%s1107_s2 + $0xc4] ss:$12 sps:$4 sm:$0xff]   ;;  %420 = vmatprep.mubr.bf16.mxu1 %v26_v31  ;;  %379 = vmatprep.mubr.bf16.mxu0 %v26_v31  ;;  %v816_v41 = vld [vmem:[%s1107_s2 + $0xdc] ss:$12 sps:$4 sm:$0xff]   ;;  %v819_v43 = vld [vmem:[%s1107_s2 + $0xf4] ss:$12 sps:$4 sm:$0xff]  }
   0xe   :  { %v631_v38 = vadd.f32 %v630_v32, %v629_v37 }
   0xf   :  { %354 = vmatpush1.bf16.msra.mxu0 %v791_v14  ;;  %755 = vmatpush3.bf16.msra.mxu1 %v792_v15 }
  0x10   :  { %355 = vmatprep.subr.bf16.mxu0 %v793_v16  ;;  %756 = vmatprep.subr.bf16.mxu1 %v795_v17 }
  0x11   :  { %632 = vadd.xlane.f32.xlu0 %v631_v38 }
  0x13   :  { %356 = vmatpush1.bf16.msra.mxu0 %v796_v18  ;;  %757 = vmatpush3.bf16.msra.mxu1 %v797_v19 }
  0x14   :  { %357 = vmatprep.subr.bf16.mxu0 %v798_v20  ;;  %758 = vmatprep.subr.bf16.mxu1 %v800_v21 }
  0x17   :  { %358 = vmatpush1.bf16.msra.mxu0 %v801_v22  ;;  %759 = vmatpush3.bf16.msra.mxu1 %v802_v23 }
  0x18   :  { %359 = vmatprep.subr.bf16.mxu0 %v803_v24  ;;  %760 = vmatprep.subr.bf16.mxu1 %v805_v25 }
  0x1b   :  { %360 = vmatpush1.bf16.msra.mxu0 %v806_v26  ;;  %761 = vmatpush3.bf16.msra.mxu1 %v807_v27 }
  0x1c   :  { %361 = vmatprep.subr.bf16.mxu0 %v808_v28  ;;  %762 = vmatprep.subr.bf16.mxu1 %v810_v29 }
  0x1f   :  { %362 = vmatpush1.bf16.msra.mxu0 %v811_v33  ;;  %763 = vmatpush3.bf16.msra.mxu1 %v812_v35 }
  0x20   :  { %363 = vmatprep.subr.bf16.mxu0 %v813_v36  ;;  %554 = vmatprep.subr.mxu1 %v24_v30 }
  0x22   :  { %421 = vmatmul.mubr.bf16.vlgmr.msra.gmra.mrb[0].mxu1 %v25_v39 }
  0x23   :  { %364 = vmatpush1.bf16.msra.mxu0 %v815_v40  ;;  %618 = vmatprep.mubr.f32.mxu1 %v24_v30 }
  0x24   :  { %365 = vmatprep.subr.bf16.mxu0 %v816_v41 }
  0x25   :  { %11 = vsyncpa [#allocation4], 0  ;;  %v821_v44 = vld [vmem:[%s1107_s2 + $0xf0] ss:$12 sps:$4 sm:$0xff]   ;;  %v822_v45 = vld [vmem:[%s1107_s2 + $0x10c] ss:$12 sps:$4 sm:$0xff]   ;;  %v477_v55 = vlaneseq }
  0x26   :  { %v824_v46 = vld [vmem:[%s1107_s2 + $0x108] ss:$12 sps:$4 sm:$0xff]   ;;  %v825_v47 = vld [vmem:[%s1107_s2 + $0x124] ss:$12 sps:$4 sm:$0xff]   ;;  %v827_v48 = vld [vmem:[%s1107_s2 + $0x120] ss:$12 sps:$4 sm:$0xff]  }
  0x27   :  { %366 = vmatpush1.bf16.msra.mxu0 %v818_v42  ;;  %v828_v49 = vld [vmem:[%s1107_s2 + $0x13c] ss:$12 sps:$4 sm:$0xff]   ;;  %v830_v50 = vld [vmem:[%s1107_s2 + $0x138] ss:$12 sps:$4 sm:$0xff]   ;;  %v831_v51 = vld [vmem:[%s1107_s2 + $0x154] ss:$12 sps:$4 sm:$0xff]  }
  0x28   :  { %367 = vmatprep.subr.bf16.mxu0 %v819_v43  ;;  %555 = vmatpush1.xpose.msra.mxu1 %v23_v34  ;;  %v833_v52 = vld [vmem:[%s1107_s2 + $0x150] ss:$12 sps:$4 sm:$0xff]   ;;  %v834_v53 = vld [vmem:[%s1107_s2 + $0x16c] ss:$12 sps:$4 sm:$0xff]   ;;  %v836_v54 = vld [vmem:[%s1107_s2 + $0x168] ss:$12 sps:$4 sm:$0xff]  }
  0x29   :  { %v1058_v61 = vshrl.u32 %v477_v55, 7  ;;  %v1060_v62 = vand.u32 127, %v477_v55  ;;  %vm635_vm1 = vcmask 64512   ;;  %vm443_vm2 = vcmask 261120   ;;  %s875_s2 = smov 112   ;;  %s877_s20 = smov [#allocation3]  }
  0x2a   :  { %vm460_vm5 = vcmask 916480   ;;  %vm501_vm6 = vcmask 1040384   ;;  %vm503_vm7 = vcmask 122880   ;;  %s692_s21 = sshll.u32 %s877_s20, 4  ;;  %vm684_vm8 = vcmask 0   ;;  %s693_s21 = int_to_ptr.vmem [resolvable:$true] %s692_s21 }
  0x2b   :  { %368 = vmatpush1.bf16.msra.mxu0 %v821_v44  ;;  %619 = vmatmul.mubr.f32.vlgmr.msra.gmra.mrb[4].mxu1 %v23_v34  ;;  %vm628_vm0 = vcmp.ne.s32.totalorder %v1058_v61, %v1060_v62  ;;  %s851_s22 = scalar_lea.vmem %s693_s21, 16  ;;  %s855_s23 = scalar_lea.vmem %s693_s21, 32 }
  0x2c   :  { %369 = vmatprep.subr.bf16.mxu0 %v822_v45  ;;  %p852_p0 = scmp.ne.s32.totalorder %s693_s21, %s851_s22  ;;  %p856_p1 = scmp.lt.s32.totalorder %s693_s21, %s693_s21 }
  0x2d   :  { %p857_p2 = scmp.lt.s32.totalorder %s855_s23, %s851_s22 }
  0x2f   :  { %370 = vmatpush1.bf16.msra.mxu0 %v824_v46  ;;  %p858_p3 = por %p857_p2, %p856_p1 }
  0x30   :  { %371 = vmatprep.subr.bf16.mxu0 %v825_v47 }
  0x31   :  { %p859_p4 = pnand %p858_p3, %p852_p0 }
  0x33   :  { %372 = vmatpush1.bf16.msra.mxu0 %v827_v48 }
  0x34   :  { %373 = vmatprep.subr.bf16.mxu0 %v828_v49 }
  0x37   :  { %374 = vmatpush1.bf16.msra.mxu0 %v830_v50 }
  0x38   :  { %375 = vmatprep.subr.bf16.mxu0 %v831_v51 }
  0x3b   :  { %376 = vmatpush1.bf16.msra.mxu0 %v833_v52 }
  0x3c   :  { %377 = vmatprep.subr.bf16.mxu0 %v834_v53 }
  0x3f   :  { %378 = vmatpush1.bf16.msra.mxu0 %v836_v54 }
  0x42   :  { %380 = vmatmul.mubr.bf16.vlgmr.msra.gmra.mrb[0].mxu0 %v25_v39 }
  0x9e   :  { %v633_v9 = vpop.xlane.xlu0 %632 }
  0xf5   :  { %v764_v56 = vpop.f32.mrb[0].mxu1 }
  0xf6   :  { %v765_v57 = vpop.f32.mrb[1].mxu1 }
  0xf7   :  { %v766_v58 = vadd.f32 %v765_v57, %v764_v56  ;;  %v767_v59 = vpop.f32.mrb[2].mxu1  ;;  %v876_v56 = vmov 1966171168  }
  0xf8   :  { %v768_v60 = vpop.f32.mrb[3].mxu1  ;;  %v475_v57 = vunpack.c.l.s4 %v876_v56 }
  0xf9   :  { %v430_v7 = vmul.f32 %v766_v58, %v766_v58 }
  0xfa   :  { %v476_v58 = vunpack.c.0.s8 %v475_v57 }
  0xfb   :  { %v444_v11 = vsel %vm443_vm2, %v430_v7, 0.0 }
  0xfc   :  { %v445_v15 = vrot.slane %v444_v11, 4 }
  0xfe   :  { %v620_v63 = vpop.f32.mrb[4].mxu1  ;;  %v446_v17 = vadd.f32 %v445_v15, %v444_v11  ;;  %v493_v11 = vsub.s32 0, %v1058_v61 }
  0xff   :  { %v634_v0 = vsel %vm628_vm0, 0.0, %v620_v63  ;;  %v622_v1 = vpop.f32.mrb[5].mxu1  ;;  %v644_v12 = vmul.f32 2.0, %v620_v63  ;;  %v479_v63 = vsub.s32 %v476_v58, %v1058_v61 }
 0x100   :  { %v636_v2 = vsel %vm635_vm1, %v634_v0, 0.0  ;;  %v447_v23 = vrot.slane %v446_v17, 2 }
 0x101   :  { %v637_v3 = vrot.slane %v636_v2, 4 }
 0x102   :  { %v448_v26 = vadd.f32 %v447_v23, %v446_v17 }
 0x103   :  { %v638_v4 = vadd.f32 %v637_v3, %v636_v2 }
 0x104   :  { %v449_v34 = vrot.slane %v448_v26, 1 }
 0x105   :  { %v639_v5 = vrot.slane %v638_v4, 2 }
 0x106   :  { %v450_v40 = vadd.f32 %v449_v34, %v448_v26 }
 0x107   :  { %v640_v6 = vadd.f32 %v639_v5, %v638_v4 }
 0x108   :  { %v453_v42 = vmul.f32 0.125, %v450_v40 }
 0x109   :  { %v641_v8 = vrot.slane %v640_v6, 1 }
 0x10b   :  { %v642_v10 = vadd.f32 %v641_v8, %v640_v6 }
 0x10d   :  { %v643_v13 = vadd.f32 %v642_v10, %v633_v9  ;;  %v466_v9 = vld [vmem:[%s1108_s3] sm:$0x3] }
 0x10f   :  { %v645_v14 = vsub.f32 %v643_v13, %v644_v12  ;;  %v497_v12 = vsub.s32 1, %v1058_v61 }
 0x111   :  { %v646_v16 = vmax.f32 %v645_v14, 0.0 }
 0x113   :  { %837 = vrsqrt.f32 %v646_v16  ;;  %vm649_vm3 = vcmp.eq.f32.partialorder %v646_v16, inf  ;;  %v652_v31 = vand.u32 2147483648, %v646_v16  ;;  %vm651_vm4 = vcmp.eq.f32.partialorder %v646_v16, 0.0 }
 0x115   :  { %v381_v18 = vpop.f32.mrb[0].mxu0 }
 0x116   :  { %v383_v19 = vpop.f32.mrb[1].mxu0  ;;  %v428_v43 = vmul.f32 %v381_v18, %v381_v18  ;;  %v666_v18 = vld [vmem:[%s1109_s4] sm:$0xff] }
 0x117   :  { %v429_v20 = vmul.f32 %v383_v19, %v383_v19  ;;  %v385_v21 = vpop.f32.mrb[2].mxu0 }
 0x118   :  { %v386_v22 = vpop.f32.mrb[3].mxu0  ;;  %v431_v44 = vrot.slane %v428_v43, 4 }
 0x119   :  { %v437_v24 = vrot.slane %v429_v20, 4 }
 0x11a   :  { %v432_v45 = vadd.f32 %v431_v44, %v428_v43 }
 0x11b   :  { %v438_v25 = vadd.f32 %v437_v24, %v429_v20 }
 0x11c   :  { %v433_v46 = vrot.slane %v432_v45, 2 }
 0x11d   :  { %v439_v27 = vrot.slane %v438_v25, 2  ;;  %v838_v28 = vpop.eup %837 }
 0x11e   :  { %v648_v29 = vmul.f32 %v838_v28, %v646_v16  ;;  %v434_v47 = vadd.f32 %v433_v46, %v432_v45 }
 0x11f   :  { %v440_v30 = vadd.f32 %v439_v27, %v438_v25 }
 0x120   :  { %v650_v32 = vsel %vm649_vm3, %v646_v16, %v648_v29  ;;  %v435_v48 = vrot.slane %v434_v47, 1 }
 0x121   :  { %v441_v33 = vrot.slane %v440_v30, 1  ;;  %v653_v35 = vsel %vm651_vm4, %v652_v31, %v650_v32 }
 0x122   :  { %v654_v36 = vsub.f32 0.0, %v653_v35  ;;  %v436_v50 = vadd.f32 %v435_v48, %v434_v47 }
 0x123   :  { %v442_v37 = vadd.f32 %v441_v33, %v440_v30 }
 0x124   :  { %v655_v38 = vsel %vm628_vm0, %v654_v36, -inf  ;;  %v451_v52 = vmul.f32 0.125, %v436_v50 }
 0x125   :  { %v452_v39 = vmul.f32 0.125, %v442_v37  ;;  %v656_v41 = vsel %vm635_vm1, %v655_v38, -inf }
 0x126   :  { %657 = vmax.xlane.f32.xlu0 %v656_v41 }
 0x127   :  { %456 = vrot.lane.b32.xlu1 %v452_v39, %s875_s2 }
 0x12b   :  { %458 = vrot.lane.b32.xlu1 %v453_v42, %s875_s2 }
 0x199   :  { %v457_v49 = vpop.permute.xlu1 %456 }
 0x19d   :  { %v459_v51 = vpop.permute.xlu1 %458 }
 0x19e   :  { %v461_v53 = vsel %vm460_vm5, %v457_v49, %v459_v51  ;;  %v465_v54 = vadd.f32 %v459_v51, %v452_v39  ;;  %v551_v51 = vstv %s1105_s0 }
 0x19f   :  { %v464_v55 = vadd.f32 %v461_v53, %v451_v52 }
 0x1a0   :  { %839 = vlog2.f32 %v465_v54 }
 0x1a1   :  { %841 = vlog2.f32 %v464_v55  ;;  %v510_v0 = vcombine.low %v464_v55, %v465_v54 }
 0x1a3   :  { %v517_v3 = vrot.slane %v510_v0, %v479_v63 }
 0x1a5   :  { %v524_v8 = vrot.slane %v517_v3, %v479_v63 }
 0x1a7   :  { %v526_v13 = vmul.f32 %v524_v8, %v466_v9 }
 0x1a9   :  { %v531_v15 = vrot.slane %v526_v13, %v493_v11  ;;  %v535_v16 = vrot.slane %v526_v13, %v497_v12 }
 0x1aa   :  { %v840_v59 = vpop.eup %839 }
 0x1ab   :  { %v842_v60 = vpop.eup %841  ;;  %v470_v2 = vmul.f32 0.6931472, %v840_v59  ;;  %v538_v21 = vsel %vm501_vm6, %v531_v15, 0.0  ;;  %v539_v22 = vsel %vm503_vm7, %v535_v16, 0.0 }
 0x1ac   :  { %v468_v1 = vmul.f32 0.6931472, %v842_v60  ;;  %v540_v28 = vadd.f32 %v539_v22, %v538_v21 }
 0x1ae   :  { %v473_v5 = vcombine.low %v468_v1, %v470_v2 }
 0x1b0   :  { %v480_v10 = vrot.slane %v473_v5, %v479_v63 }
 0x1b2   :  { %v487_v14 = vrot.slane %v480_v10, %v479_v63 }
 0x1b3   :  { %v658_v4 = vpop.xlane.xlu0 %657 }
 0x1b4   :  { %v659_v6 = vsub.f32 %v654_v36, %v658_v4  ;;  %v489_v17 = vmul.f32 %v487_v14, %v466_v9 }
 0x1b6   :  { %v660_v7 = vmul.f32 1.442695, %v659_v6  ;;  %v494_v25 = vrot.slane %v489_v17, %v493_v11  ;;  %v498_v26 = vrot.slane %v489_v17, %v497_v12 }
 0x1b8   :  { %843 = vpow2.f32 %v660_v7  ;;  %v502_v29 = vsel %vm501_vm6, %v494_v25, 0.0  ;;  %v504_v30 = vsel %vm503_vm7, %v498_v26, 0.0 }
 0x1b9   :  { %v505_v61 = vadd.f32 %v504_v30, %v502_v29 }
 0x1c2   :  { %v844_v19 = vpop.eup %843 }
 0x1c3   :  { %v662_v20 = vsel %vm628_vm0, %v844_v19, 0.0 }
 0x1c4   :  { %v663_v23 = vsel %vm635_vm1, %v662_v20, 0.0  ;;  %v667_v24 = vmul.f32 %v666_v18, %v662_v20 }
 0x1c5   :  { %664 = vadd.xlane.f32.xlu0 %v663_v23 }
 0x1c6   :  { %v668_v27 = vsel %vm635_vm1, %v667_v24, 0.0 }
 0x1c7   :  { %669 = vadd.xlane.f32.xlu1 %v668_v27 }
 0x1c9   :  { %541 = vadd.xlane.f32.xlu0 %v540_v28 }
 0x1cd   :  { %506 = vadd.xlane.f32.xlu0 %v505_v61 }
 0x252   :  { %v665_v62 = vpop.xlane.xlu0 %664 }
 0x253   :  { %845 = vlog2.f32 %v665_v62 }
 0x254   :  { %v670_v31 = vpop.xlane.xlu1 %669 }
 0x255   :  { %847 = vlog2.f32 %v670_v31 }
 0x256   :  { %v542_v32 = vpop.xlane.xlu0 %541 }
 0x257   :  { %v544_v33 = vmul.f32 0.00390625, %v542_v32 }
 0x259   :  { %849 = vlog2.f32 %v544_v33 }
 0x25a   :  { %v507_v38 = vpop.xlane.xlu0 %506 }
 0x25b   :  { %v543_v43 = vmul.f32 0.00390625, %v507_v38 }
 0x25d   :  { %v846_v34 = vpop.eup %845 }
 0x25e   :  { %v672_v36 = vmul.f32 0.6931472, %v846_v34 }
 0x25f   :  { %v848_v35 = vpop.eup %847 }
 0x260   :  { %v674_v37 = vmul.f32 0.6931472, %v848_v35 }
 0x262   :  { %v675_v39 = vsub.f32 %v672_v36, %v674_v37 }
 0x263   :  { %v850_v40 = vpop.eup %849 }
 0x264   :  { %v676_v41 = vrot.slane %v675_v39, 4  ;;  %v546_v42 = vmul.f32 0.6931472, %v850_v40 }
 0x266   :  { %v677_v44 = vadd.f32 %v676_v41, %v675_v39  ;;  %v547_v45 = vsub.f32 %v543_v43, %v546_v42 }
 0x268   :  { %v678_v46 = vrot.slane %v677_v44, 2  ;;  %v548_v47 = vmax.f32 %v547_v45, 0.0 }
 0x26a   :  { %v679_v48 = vadd.f32 %v678_v46, %v677_v44  ;;  %v549_v49 = vmin.f32 %v548_v47, 100.0 }
 0x26c   :  { %v680_v50 = vrot.slane %v679_v48, 1  ;;  %v552_v53 = vmul.f32 %v551_v51, %v549_v49 }
 0x26e   :  { %v681_v52 = vadd.f32 %v680_v50, %v679_v48 }
 0x270   :  { %v682_v54 = vmul.f32 0.005, %v681_v52 }
 0x272   :  { %v683_v55 = vadd.f32 %v682_v54, %v552_v53 }
 0x274   :  { %685 = vst.msk [vmem:[#allocation3] sm:$0x1] %vm684_vm8, %v683_v55 }
 0x275   :  { %862 = shalt.err (!%p859_p4)
}
 0x276   :  { %s863_s0 = scalar_lea.hbm %s1110_s5, 16 }
 0x277   :  { %p864_p5 = scmp.ne.s32.totalorder %s1110_s5, %s863_s0  ;;  %p867_p6 = scmp.lt.u32.totalorder %s863_s0, %s1110_s5 }
 0x279   :  { %p869_p7 = pnand %p867_p6, %p864_p5 }
 0x27b   :  { %872 = shalt.err (!%p869_p7)
}
 0x27c   :  { %695 = dma.vmem_to_hbm [thread:$0]  %s693_s21, 16, %s1110_s5, [#allocation4]  }
 0x27d   :  { %873 = dma.done.wait [#allocation4], 16  }
 0x27e   :  { %874 = vsyncadd [#allocation4], 4294967280 }
 0x27f   :  { %699 = vsyncpa [#allocation4], 1 }

</bundles_post_ra>
